<compile_context>
chip_gen: v7x
topology: tpu7x:2x2x1
jax: 0.10.0
libtpu: 0.0.40
codegen_flags: <defaults>
</compile_context>

<pallas_src>
import numpy as np
import jax
import jax.numpy as jnp
from jax.experimental import pallas as pl
from jax.experimental.pallas import tpu as pltpu


def _round_up(x, m):
    return (x + m - 1) // m * m


def _tensorcores_per_chip():
    # v7x exposes 2 TensorCores per chip to one Pallas call ("parallel" grid
    # axes shard across them); v5e/v6e have a single TC, so extra grid steps
    # are pure serial overhead (~0.35 us each) on a kernel this small.
    try:
        kind = jax.devices()[0].device_kind.lower()
    except Exception:
        return 1
    return 2 if "v7" in kind else 1


def _vmem_budget_bytes():
    try:
        cap = getattr(pltpu.get_tpu_info(), "vmem_capacity_bytes", None)
        if cap:
            return int(cap) // 4
    except Exception:
        pass
    return 16 * 1024 * 1024  # conservative: fits v5e/v6e/v7x scoped defaults


def _choose_num_blocks(NC, bytes_per_slice, min_blocks):
    """Fewest grid steps >= min_blocks whose double-buffered block fits VMEM."""
    budget = _vmem_budget_bytes()
    nb = min_blocks
    while nb < NC and (NC % nb != 0 or 2 * (NC // nb) * bytes_per_slice > budget):
        nb += 1
    if NC % nb != 0:
        nb = NC
    return nb


def _tree_max(vals):
    while len(vals) > 1:
        nxt = [jnp.maximum(vals[i], vals[i + 1]) for i in range(0, len(vals) - 1, 2)]
        if len(vals) % 2:
            nxt.append(vals[-1])
        vals = nxt
    return vals[0]


def _make_maxpool_kernel(K, S, Hout, Wout):
    """Kernel over a chunk of flattened (n, c) slices.

    xp_ref: (nc_blk, S*S, Hs, Ws) phase-decomposed padded input,
            xp[a, ph*S+pw, u, v] == x_pad[a, S*u+ph, S*v+pw]
    o_ref : (nc_blk, Hout, Wout)
    """

    def kernel(xp_ref, o_ref):
        in_dtype = xp_ref.dtype
        if jnp.issubdtype(in_dtype, jnp.floating) and jnp.dtype(in_dtype).itemsize < 4:
            acc_dtype = jnp.float32  # cast once on load (exact for max)
        else:
            acc_dtype = in_dtype

        if K % S == 0:
            nq = K // S  # window taps per phase along each spatial axis
            # (1) Phase max: S*S identically-shaped, aligned slabs -> pure VALU.
            pm = _tree_max(
                [xp_ref[:, p, :, :].astype(acc_dtype) for p in range(S * S)]
            )
            # (2) Shifted-window max: H (sublanes) then W (lanes). Only
            #     (nq-1)*2 shifted views total (vs K*K before the reorder).
            th = pm[:, 0:Hout, :]
            for q in range(1, nq):
                th = jnp.maximum(th, pm[:, q:q + Hout, :])
            tw = th[:, :, 0:Wout]
            for q in range(1, nq):
                tw = jnp.maximum(tw, th[:, :, q:q + Wout])
            # (3) Single store of the output window.
            o_ref[...] = tw.astype(o_ref.dtype)
        else:
            # General fallback: non-uniform per-phase window counts.
            vals = []
            for ph in range(S):
                nqh = (K - 1 - ph) // S + 1
                for pw in range(S):
                    nqw = (K - 1 - pw) // S + 1
                    slab = xp_ref[:, ph * S + pw, :, :].astype(acc_dtype)
                    for qh in range(nqh):
                        for qw in range(nqw):
                            vals.append(slab[:, qh:qh + Hout, qw:qw + Wout])
            o_ref[...] = _tree_max(vals).astype(o_ref.dtype)

    return kernel


def maxpool2d_pallas(x, kernel_size, stride, padding):
    """MaxPool2d(kernel_size, stride, padding) on an NCHW tensor via Pallas."""
    N, C, H, W = x.shape
    K, S, P = kernel_size, stride, padding
    Hout = (H + 2 * P - K) // S + 1
    Wout = (W + 2 * P - K) // S + 1

    if jnp.issubdtype(x.dtype, jnp.floating):
        pad_val = -jnp.inf
    else:
        pad_val = jnp.iinfo(x.dtype).min

    NC = N * C
    x_flat = x.reshape(NC, H, W)

    # Padded extents: exactly what the windows touch, rounded to the stride.
    Hs = Hout + (K - 1) // S
    Ws = Wout + (K - 1) // S
    Hp, Wp = S * Hs, S * Ws

    # Rows/cols beyond (Hp - P)/(Wp - P) never enter any valid window.
    x_flat = x_flat[:, : max(0, Hp - P), : max(0, Wp - P)]
    pad_b = Hp - P - x_flat.shape[1]
    pad_r = Wp - P - x_flat.shape[2]
    x_pad = jnp.pad(
        x_flat, ((0, 0), (P, pad_b), (P, pad_r)), constant_values=pad_val
    )

    # Phase decomposition with NC leading so each block is contiguous in HBM:
    #   xp[a, ph*S+pw, u, v] = x_pad[a, S*u+ph, S*v+pw]
    # allow_input_fusion below lets XLA fold this (and the pad) into the
    # Mosaic call rather than materializing xp in HBM.
    xp = (
        x_pad.reshape(NC, Hs, S, Ws, S)
        .transpose(0, 2, 4, 1, 3)
        .reshape(NC, S * S, Hs, Ws)
    )

    # Block count: 1 on single-TC chips (v5e/v6e), 2 on dual-TC v7x; grown
    # only if a double-buffered block would exceed the VMEM budget.
    itemsize = jnp.dtype(x.dtype).itemsize
    bytes_per_slice = S * S * _round_up(Hs, 8) * _round_up(Ws, 128) * itemsize
    tc = _tensorcores_per_chip()
    min_blocks = tc if (NC >= tc and NC % tc == 0) else 1
    num_blocks = _choose_num_blocks(NC, bytes_per_slice, min_blocks)
    nc_blk = NC // num_blocks

    kernel = _make_maxpool_kernel(K, S, Hout, Wout)

    cost = pl.CostEstimate(
        flops=NC * Hout * Wout * K * K,
        transcendentals=0,
        bytes_accessed=xp.size * itemsize + NC * Hout * Wout * itemsize,
    )

    out_flat = pl.pallas_call(
        kernel,
        out_shape=jax.ShapeDtypeStruct((NC, Hout, Wout), x.dtype),
        grid=(num_blocks,),
        in_specs=[
            pl.BlockSpec((nc_blk, S * S, Hs, Ws), lambda a: (a, 0, 0, 0)),
        ],
        out_specs=pl.BlockSpec((nc_blk, Hout, Wout), lambda a: (a, 0, 0)),
        compiler_params=pltpu.CompilerParams(
            dimension_semantics=("parallel",),
            allow_input_fusion=[True],
        ),
        cost_estimate=cost,
    )(xp)

    return out_flat.reshape(N, C, Hout, Wout)


class PoolingtestPallas:
    """Mirror of the PyTorch module: MaxPool2d(in_channels, out_channels, 2)."""

    def __init__(self, in_channels, out_channels):
        # nn.MaxPool2d positional args: (kernel_size, stride, padding)
        self.kernel_size = in_channels
        self.stride = out_channels
        self.padding = 2

    def __call__(self, x):
        return maxpool2d_pallas(x, self.kernel_size, self.stride, self.padding)


if __name__ == "__main__":
    # Module config: in_channels=4, out_channels=2
    #   -> MaxPool2d(kernel_size=4, stride=2, padding=2)
    in_channels, out_channels = 4, 2
    N, C, H, W = 2, in_channels, 16, 16

    key = jax.random.PRNGKey(0)
    x = jax.random.normal(key, (N, C, H, W), dtype=jnp.float32)

    model = PoolingtestPallas(in_channels, out_channels)
    out = model(x)
    out = jax.block_until_ready(out)

    # Reference: XLA reduce_window with identical semantics.
    ref = jax.lax.reduce_window(
        x,
        -jnp.inf,
        jax.lax.max,
        window_dimensions=(1, 1, in_channels, in_channels),
        window_strides=(1, 1, out_channels, out_channels),
        padding=((0, 0), (0, 0), (2, 2), (2, 2)),
    )

    assert out.shape == ref.shape, (out.shape, ref.shape)
    np.testing.assert_allclose(np.asarray(out), np.asarray(ref), rtol=0, atol=0)
    print("KERNEL_OK")
</pallas_src>

<mosaic_0001>
module attributes {stable_mosaic.version = 11 : i64} {
  func.func @kernel(%arg0: i32, %arg1: memref<8x4x10x10xf32, #tpu.memory_space<vmem>>, %arg2: memref<8x9x9xf32, #tpu.memory_space<vmem>>) attributes {dimension_semantics = [#tpu.dimension_semantics<parallel>], iteration_bounds = array<i64: 1>, scalar_prefetch = 0 : i64, scratch_operands = 0 : i64, tpu.core_type = #tpu.core_type<tc>, window_params = [{transform_indices = @transform_0, window_bounds = array<i64: 8, 4, 10, 10>}, {transform_indices = @transform_1, window_bounds = array<i64: 8, 9, 9>}]} {
    %c0 = arith.constant 0 : index
    %c0_0 = arith.constant 0 : index
    %c0_1 = arith.constant 0 : index
    %c0_2 = arith.constant 0 : index
    %0 = vector.load %arg1[%c0, %c0_0, %c0_1, %c0_2] : memref<8x4x10x10xf32, #tpu.memory_space<vmem>>, vector<8x1x10x10xf32>
    %1 = vector.shape_cast %0 : vector<8x1x10x10xf32> to vector<8x10x10xf32>
    %c0_3 = arith.constant 0 : index
    %c1 = arith.constant 1 : index
    %c0_4 = arith.constant 0 : index
    %c0_5 = arith.constant 0 : index
    %2 = vector.load %arg1[%c0_3, %c1, %c0_4, %c0_5] : memref<8x4x10x10xf32, #tpu.memory_space<vmem>>, vector<8x1x10x10xf32>
    %3 = vector.shape_cast %2 : vector<8x1x10x10xf32> to vector<8x10x10xf32>
    %c0_6 = arith.constant 0 : index
    %c2 = arith.constant 2 : index
    %c0_7 = arith.constant 0 : index
    %c0_8 = arith.constant 0 : index
    %4 = vector.load %arg1[%c0_6, %c2, %c0_7, %c0_8] : memref<8x4x10x10xf32, #tpu.memory_space<vmem>>, vector<8x1x10x10xf32>
    %5 = vector.shape_cast %4 : vector<8x1x10x10xf32> to vector<8x10x10xf32>
    %c0_9 = arith.constant 0 : index
    %c3 = arith.constant 3 : index
    %c0_10 = arith.constant 0 : index
    %c0_11 = arith.constant 0 : index
    %6 = vector.load %arg1[%c0_9, %c3, %c0_10, %c0_11] : memref<8x4x10x10xf32, #tpu.memory_space<vmem>>, vector<8x1x10x10xf32>
    %7 = vector.shape_cast %6 : vector<8x1x10x10xf32> to vector<8x10x10xf32>
    %8 = arith.maximumf %1, %3 : vector<8x10x10xf32>
    %9 = arith.maximumf %5, %7 : vector<8x10x10xf32>
    %10 = arith.maximumf %8, %9 : vector<8x10x10xf32>
    %11 = vector.extract_strided_slice %10 {offsets = [0, 0, 0], sizes = [8, 9, 10], strides = [1, 1, 1]} : vector<8x10x10xf32> to vector<8x9x10xf32>
    %12 = vector.extract_strided_slice %10 {offsets = [0, 1, 0], sizes = [8, 9, 10], strides = [1, 1, 1]} : vector<8x10x10xf32> to vector<8x9x10xf32>
    %13 = arith.maximumf %11, %12 : vector<8x9x10xf32>
    %14 = vector.extract_strided_slice %13 {offsets = [0, 0, 0], sizes = [8, 9, 9], strides = [1, 1, 1]} : vector<8x9x10xf32> to vector<8x9x9xf32>
    %15 = vector.extract_strided_slice %13 {offsets = [0, 0, 1], sizes = [8, 9, 9], strides = [1, 1, 1]} : vector<8x9x10xf32> to vector<8x9x9xf32>
    %16 = arith.maximumf %14, %15 : vector<8x9x9xf32>
    %c0_12 = arith.constant 0 : index
    %c0_13 = arith.constant 0 : index
    %c0_14 = arith.constant 0 : index
    %17 = vector.load %arg2[%c0_12, %c0_13, %c0_14] : memref<8x9x9xf32, #tpu.memory_space<vmem>>, vector<8x9x9xf32>
    tpu.vector_store %arg2[%c0_12, %c0_13, %c0_14], %16 {strides = array<i32>} : memref<8x9x9xf32, #tpu.memory_space<vmem>>, vector<8x9x9xf32>,
    return
  }
  func.func @transform_0(%arg0: i32) -> (i32, i32, i32, i32) {
    %c0_i32 = arith.constant 0 : i32
    %c0_i32_0 = arith.constant 0 : i32
    %c0_i32_1 = arith.constant 0 : i32
    %c0_i32_2 = arith.constant 0 : i32
    return %arg0, %c0_i32, %c0_i32_0, %c0_i32_1 : i32, i32, i32, i32
  }
  func.func @transform_1(%arg0: i32) -> (i32, i32, i32) {
    %c0_i32 = arith.constant 0 : i32
    %c0_i32_0 = arith.constant 0 : i32
    %c0_i32_1 = arith.constant 0 : i32
    return %arg0, %c0_i32, %c0_i32_0 : i32, i32, i32
  }
}

</mosaic_0001>

<bundles_post_ra>
// kernel: tpu_custom_call.1
= control target key start
LH: loop header
LB: loop body
LE: loop exit
PB: predicated region body
PF: predicated region fallthrough
CT: control target
= control target key end

     0   :  { %vm139_vm0 = vcmask 1046528   ;;  %s347_s8 = smov 127   ;;  %vm278_vm1 = vcmask 65536   ;;  %vm276_vm2 = vcmask 72704   ;;  %s678_s0 = inlined_call_operand.vmem [shape: f32[8,4,10,10], index: 0, kind: input, shape index: {}]   ;;  %s679_s1 = inlined_call_operand.vmem [shape: f32[8,9,9], index: 1, kind: output, shape index: {}]  }
   0x1   :  { %v11_v0 = vld [vmem:[%s678_s0 + $0x48] sm:$0x3]  ;;  %v301_v1 = vld [vmem:[%s678_s0 + $0x58] sm:$0x3]  ;;  %v8_v19 = vld [vmem:[%s678_s0] sm:$0xff] }
   0x2   :  { %v317_v2 = vld [vmem:[%s678_s0 + $0x68] sm:$0x3]  ;;  %v333_v3 = vld [vmem:[%s678_s0 + $0x78] sm:$0x3]  ;;  %v78_v4 = vmax.f32 %v11_v0, %v301_v1  ;;  %v298_v20 = vld [vmem:[%s678_s0 + $0x10] sm:$0xff] }
   0x3   :  { %v9_v5 = vld [vmem:[%s678_s0 + $0x8] sm:$0x3]  ;;  %v299_v6 = vld [vmem:[%s678_s0 + $0x18] sm:$0x3]  ;;  %v94_v7 = vmax.f32 %v317_v2, %v333_v3  ;;  %v314_v21 = vld [vmem:[%s678_s0 + $0x20] sm:$0xff]  ;;  %v75_v24 = vmax.f32 %v8_v19, %v298_v20 }
   0x4   :  { %v315_v8 = vld [vmem:[%s678_s0 + $0x28] sm:$0x3]  ;;  %v331_v9 = vld [vmem:[%s678_s0 + $0x38] sm:$0x3]  ;;  %v76_v10 = vmax.f32 %v9_v5, %v299_v6  ;;  %v330_v23 = vld [vmem:[%s678_s0 + $0x30] sm:$0xff] }
   0x5   :  { %v13_v11 = vld [vmem:[%s678_s0 + $0x88] sm:$0x3]  ;;  %v92_v12 = vmax.f32 %v315_v8, %v331_v9  ;;  %v303_v13 = vld [vmem:[%s678_s0 + $0x98] sm:$0x3]  ;;  %v394_v16 = vmax.f32 %v78_v4, %v94_v7  ;;  %v10_v25 = vld [vmem:[%s678_s0 + $0x40] sm:$0xff]  ;;  %v91_v29 = vmax.f32 %v314_v21, %v330_v23 }
   0x6   :  { %v319_v14 = vld [vmem:[%s678_s0 + $0xa8] sm:$0x3]  ;;  %v335_v15 = vld [vmem:[%s678_s0 + $0xb8] sm:$0x3]  ;;  %v80_v17 = vmax.f32 %v13_v11, %v303_v13  ;;  %v300_v26 = vld [vmem:[%s678_s0 + $0x50] sm:$0xff] }
   0x7   :  { %v96_v18 = vmax.f32 %v319_v14, %v335_v15  ;;  %v108_v22 = vmax.f32 %v76_v10, %v92_v12  ;;  %v144_v27 = vrot.slane %v394_v16, 1  ;;  %v316_v30 = vld [vmem:[%s678_s0 + $0x60] sm:$0xff]  ;;  %v332_v31 = vld [vmem:[%s678_s0 + $0x70] sm:$0xff]  ;;  %v77_v32 = vmax.f32 %v10_v25, %v300_v26  ;;  %v15_v43 = vld [vmem:[%s678_s0 + $0xc8] sm:$0x3] }
   0x8   :  { %v12_v33 = vld [vmem:[%s678_s0 + $0x80] sm:$0xff]  ;;  %v93_v35 = vmax.f32 %v316_v30, %v332_v31  ;;  %v302_v36 = vld [vmem:[%s678_s0 + $0x90] sm:$0xff]  ;;  %v107_v41 = vmax.f32 %v75_v24, %v91_v29  ;;  %v305_v44 = vld [vmem:[%s678_s0 + $0xd8] sm:$0x3] }
   0x9   :  { %v415_v28 = vmax.f32 %v80_v17, %v96_v18  ;;  %v141_v34 = vrot.slane %v108_v22, 1  ;;  %v318_v37 = vld [vmem:[%s678_s0 + $0xa0] sm:$0xff]  ;;  %v334_v38 = vld [vmem:[%s678_s0 + $0xb0] sm:$0xff]  ;;  %v436_v39 = vmax.f32 %v394_v16, %v144_v27  ;;  %v79_v42 = vmax.f32 %v12_v33, %v302_v36  ;;  %v321_v49 = vld [vmem:[%s678_s0 + $0xe8] sm:$0x3] }
   0xa   :  { %v14_v45 = vld [vmem:[%s678_s0 + $0xc0] sm:$0xff]  ;;  %v109_v47 = vmax.f32 %v77_v32, %v93_v35  ;;  %v95_v48 = vmax.f32 %v318_v37, %v334_v38  ;;  %v337_v50 = vld [vmem:[%s678_s0 + $0xf8] sm:$0x3]  ;;  %v82_v51 = vmax.f32 %v15_v43, %v305_v44  ;;  %v304_v52 = vld [vmem:[%s678_s0 + $0xd0] sm:$0xff]  ;;  %v140_v54 = vrot.slane %v107_v41, 1 }
   0xb   :  { %v147_v40 = vrot.slane %v415_v28, 1  ;;  %v448_v46 = vmax.f32 %v108_v22, %v141_v34  ;;  %218 = vrot.lane.b32.xlu1 %v436_v39, %s347_s8  ;;  %v98_v55 = vmax.f32 %v321_v49, %v337_v50  ;;  %v320_v56 = vld [vmem:[%s678_s0 + $0xe0] sm:$0xff]  ;;  %v336_v57 = vld [vmem:[%s678_s0 + $0xf0] sm:$0xff]  ;;  %v81_v58 = vmax.f32 %v14_v45, %v304_v52  ;;  %v17_v59 = vld [vmem:[%s678_s0 + $0x108] sm:$0x3] }
   0xc   :  { %v143_v60 = vrot.slane %v109_v47, 1  ;;  %v111_v61 = vmax.f32 %v79_v42, %v95_v48  ;;  %v97_v62 = vmax.f32 %v320_v56, %v336_v57  ;;  %v307_v63 = vld [vmem:[%s678_s0 + $0x118] sm:$0x3]  ;;  %v323_v0 = vld [vmem:[%s678_s0 + $0x128] sm:$0x3]  ;;  %v16_v1 = vld [vmem:[%s678_s0 + $0x100] sm:$0xff]  ;;  %v142_v2 = vsel %vm139_vm0, %v140_v54, %v141_v34 }
   0xd   :  { %v462_v53 = vmax.f32 %v415_v28, %v147_v40  ;;  %214 = vrot.lane.b32.xlu0 %v448_v46, %s347_s8  ;;  %v114_v3 = vmax.f32 %v82_v51, %v98_v55  ;;  %v339_v4 = vld [vmem:[%s678_s0 + $0x138] sm:$0x3]  ;;  %v84_v5 = vmax.f32 %v17_v59, %v307_v63  ;;  %v306_v6 = vld [vmem:[%s678_s0 + $0x110] sm:$0xff]  ;;  %v322_v7 = vld [vmem:[%s678_s0 + $0x120] sm:$0xff]  ;;  %v494_v8 = vmax.f32 %v107_v41, %v142_v2 }
   0xe   :  { %v145_v9 = vsel %vm139_vm0, %v143_v60, %v144_v27  ;;  %v146_v10 = vrot.slane %v111_v61, 1  ;;  %v113_v11 = vmax.f32 %v81_v58, %v97_v62  ;;  %v338_v12 = vld [vmem:[%s678_s0 + $0x130] sm:$0xff]  ;;  %v19_v13 = vld [vmem:[%s678_s0 + $0x148] sm:$0x3]  ;;  %v309_v14 = vld [vmem:[%s678_s0 + $0x158] sm:$0x3]  ;;  %v100_v17 = vmax.f32 %v323_v0, %v339_v4 }
   0xf   :  { %222 = vrot.lane.b32.xlu1 %v462_v53, %s347_s8  ;;  %v508_v15 = vmax.f32 %v109_v47, %v145_v9  ;;  %v150_v16 = vrot.slane %v114_v3, 1  ;;  %v83_v18 = vmax.f32 %v16_v1, %v306_v6  ;;  %v325_v19 = vld [vmem:[%s678_s0 + $0x168] sm:$0x3]  ;;  %v341_v20 = vld [vmem:[%s678_s0 + $0x178] sm:$0x3]  ;;  %v18_v21 = vld [vmem:[%s678_s0 + $0x140] sm:$0xff]  ;;  %v99_v24 = vmax.f32 %v322_v7, %v338_v12 }
  0x10   :  { %v148_v22 = vsel %vm139_vm0, %v146_v10, %v147_v40  ;;  %v149_v23 = vrot.slane %v113_v11, 1  ;;  %v86_v25 = vmax.f32 %v19_v13, %v309_v14  ;;  %v308_v26 = vld [vmem:[%s678_s0 + $0x150] sm:$0xff]  ;;  %v324_v27 = vld [vmem:[%s678_s0 + $0x160] sm:$0xff]  ;;  %v116_v31 = vmax.f32 %v84_v5, %v100_v17  ;;  %v21_v33 = vld [vmem:[%s678_s0 + $0x188] sm:$0x3] }
  0x11   :  { %212 = vrot.lane.b32.xlu0 %v494_v8, %s347_s8  ;;  %v340_v28 = vld [vmem:[%s678_s0 + $0x170] sm:$0xff]  ;;  %v531_v29 = vmax.f32 %v111_v61, %v148_v22  ;;  %v533_v30 = vmax.f32 %v114_v3, %v150_v16  ;;  %v102_v32 = vmax.f32 %v325_v19, %v341_v20  ;;  %v311_v34 = vld [vmem:[%s678_s0 + $0x198] sm:$0x3]  ;;  %v327_v35 = vld [vmem:[%s678_s0 + $0x1a8] sm:$0x3]  ;;  %v115_v37 = vmax.f32 %v83_v18, %v99_v24 }
  0x12   :  { %v151_v36 = vsel %vm139_vm0, %v149_v23, %v150_v16  ;;  %v85_v38 = vmax.f32 %v18_v21, %v308_v26  ;;  %v101_v40 = vmax.f32 %v324_v27, %v340_v28  ;;  %v343_v41 = vld [vmem:[%s678_s0 + $0x1b8] sm:$0x3]  ;;  %v20_v42 = vld [vmem:[%s678_s0 + $0x180] sm:$0xff]  ;;  %v310_v43 = vld [vmem:[%s678_s0 + $0x190] sm:$0xff]  ;;  %v153_v45 = vrot.slane %v116_v31, 1 }
  0x13   :  { %216 = vrot.lane.b32.xlu1 %v508_v15, %s347_s8  ;;  %v556_v44 = vmax.f32 %v113_v11, %v151_v36  ;;  %v118_v47 = vmax.f32 %v86_v25, %v102_v32  ;;  %v88_v48 = vmax.f32 %v21_v33, %v311_v34  ;;  %v326_v49 = vld [vmem:[%s678_s0 + $0x1a0] sm:$0xff]  ;;  %v342_v50 = vld [vmem:[%s678_s0 + $0x1b0] sm:$0xff]  ;;  %v23_v51 = vld [vmem:[%s678_s0 + $0x1c8] sm:$0x3]  ;;  %v152_v52 = vrot.slane %v115_v37, 1 }
  0x14   :  { %v117_v54 = vmax.f32 %v85_v38, %v101_v40  ;;  %v104_v55 = vmax.f32 %v327_v35, %v343_v41  ;;  %v87_v56 = vmax.f32 %v20_v42, %v310_v43  ;;  %v313_v57 = vld [vmem:[%s678_s0 + $0x1d8] sm:$0x3]  ;;  %v329_v58 = vld [vmem:[%s678_s0 + $0x1e8] sm:$0x3]  ;;  %v22_v59 = vld [vmem:[%s678_s0 + $0x1c0] sm:$0xff]  ;;  %v103_v61 = vmax.f32 %v326_v49, %v342_v50 }
  0x15   :  { %220 = vrot.lane.b32.xlu0 %v531_v29, %s347_s8  ;;  %v156_v60 = vrot.slane %v118_v47, 1  ;;  %v345_v62 = vld [vmem:[%s678_s0 + $0x1f8] sm:$0x3]  ;;  %v90_v63 = vmax.f32 %v23_v51, %v313_v57  ;;  %v312_v0 = vld [vmem:[%s678_s0 + $0x1d0] sm:$0xff]  ;;  %v328_v1 = vld [vmem:[%s678_s0 + $0x1e0] sm:$0xff]  ;;  %v154_v2 = vsel %vm139_vm0, %v152_v52, %v153_v45  ;;  %v189_v7 = vmax.f32 %v116_v31, %v153_v45 }
  0x16   :  { %v155_v3 = vrot.slane %v117_v54, 1  ;;  %v120_v4 = vmax.f32 %v88_v48, %v104_v55  ;;  %v106_v5 = vmax.f32 %v329_v58, %v345_v62  ;;  %v344_v6 = vld [vmem:[%s678_s0 + $0x1f0] sm:$0xff]  ;;  %v119_v9 = vmax.f32 %v87_v56, %v103_v61 }
  0x17   :  { %226 = vrot.lane.b32.xlu1 %v533_v30, %s347_s8  ;;  %v89_v10 = vmax.f32 %v22_v59, %v312_v0  ;;  %v188_v11 = vmax.f32 %v115_v37, %v154_v2  ;;  %v105_v12 = vmax.f32 %v328_v1, %v344_v6  ;;  %v191_v19 = vmax.f32 %v118_v47, %v156_v60 }
  0x18   :  { %v157_v13 = vsel %vm139_vm0, %v155_v3, %v156_v60  ;;  %v159_v14 = vrot.slane %v120_v4, 1  ;;  %v158_v16 = vrot.slane %v119_v9, 1  ;;  %v122_v17 = vmax.f32 %v90_v63, %v106_v5 }
  0x19   :  { %224 = vrot.lane.b32.xlu0 %v556_v44, %s347_s8  ;;  %v121_v18 = vmax.f32 %v89_v10, %v105_v12  ;;  %v190_v20 = vmax.f32 %v117_v54, %v157_v13 }
  0x1a   :  { %v160_v21 = vsel %vm139_vm0, %v158_v16, %v159_v14  ;;  %v162_v22 = vrot.slane %v122_v17, 1  ;;  %v193_v24 = vmax.f32 %v120_v4, %v159_v14 }
  0x1b   :  { %230 = vrot.lane.b32.xlu1 %v189_v7, %s347_s8  ;;  %v161_v23 = vrot.slane %v121_v18, 1  ;;  %v192_v25 = vmax.f32 %v119_v9, %v160_v21 }
  0x1c   :  { %v195_v27 = vmax.f32 %v122_v17, %v162_v22 }
  0x1d   :  { %228 = vrot.lane.b32.xlu0 %v188_v11, %s347_s8  ;;  %v163_v26 = vsel %vm139_vm0, %v161_v23, %v162_v22 }
  0x1e   :  { %v194_v28 = vmax.f32 %v121_v18, %v163_v26 }
  0x1f   :  { %234 = vrot.lane.b32.xlu1 %v191_v19, %s347_s8 }
  0x21   :  { %232 = vrot.lane.b32.xlu0 %v190_v20, %s347_s8 }
  0x23   :  { %238 = vrot.lane.b32.xlu1 %v193_v24, %s347_s8 }
  0x25   :  { %236 = vrot.lane.b32.xlu0 %v192_v25, %s347_s8 }
  0x27   :  { %242 = vrot.lane.b32.xlu1 %v195_v27, %s347_s8 }
  0x29   :  { %240 = vrot.lane.b32.xlu0 %v194_v28, %s347_s8 }
  0x7d   :  { %v219_v31 = vpop.permute.xlu1 %218 }
  0x7e   :  { %v263_v32 = vmax.f32 %v436_v39, %v219_v31 }
  0x7f   :  { %v215_v33 = vpop.permute.xlu0 %214 }
  0x80   :  { %v261_v34 = vmax.f32 %v448_v46, %v215_v33  ;;  %281 = vst.msk [vmem:[%s679_s1 + $0x18] sm:$0x1] %vm278_vm1, %v263_v32 }
  0x81   :  { %v223_v35 = vpop.permute.xlu1 %222 }
  0x82   :  { %279 = vst.msk [vmem:[%s679_s1 + $0x8] sm:$0x1] %vm278_vm1, %v261_v34  ;;  %v265_v36 = vmax.f32 %v462_v53, %v223_v35 }
  0x83   :  { %v213_v37 = vpop.permute.xlu0 %212 }
  0x84   :  { %v260_v39 = vmax.f32 %v494_v8, %v213_v37  ;;  %283 = vst.msk [vmem:[%s679_s1 + $0x28] sm:$0x1] %vm278_vm1, %v265_v36 }
  0x85   :  { %v217_v46 = vpop.permute.xlu1 %216 }
  0x86   :  { %277 = vst.msk [vmem:[%s679_s1] sm:$0xff] %vm276_vm2, %v260_v39  ;;  %v262_v38 = vmax.f32 %v508_v15, %v217_v46 }
  0x87   :  { %v221_v40 = vpop.permute.xlu0 %220 }
  0x88   :  { %v264_v53 = vmax.f32 %v531_v29, %v221_v40  ;;  %280 = vst.msk [vmem:[%s679_s1 + $0x10] sm:$0xff] %vm276_vm2, %v262_v38 }
  0x89   :  { %v227_v8 = vpop.permute.xlu1 %226 }
  0x8a   :  { %282 = vst.msk [vmem:[%s679_s1 + $0x20] sm:$0xff] %vm276_vm2, %v264_v53  ;;  %v267_v41 = vmax.f32 %v533_v30, %v227_v8 }
  0x8b   :  { %v225_v42 = vpop.permute.xlu0 %224 }
  0x8c   :  { %v266_v43 = vmax.f32 %v556_v44, %v225_v42  ;;  %285 = vst.msk [vmem:[%s679_s1 + $0x38] sm:$0x1] %vm278_vm1, %v267_v41 }
  0x8d   :  { %v231_v15 = vpop.permute.xlu1 %230 }
  0x8e   :  { %284 = vst.msk [vmem:[%s679_s1 + $0x30] sm:$0xff] %vm276_vm2, %v266_v43  ;;  %v269_v29 = vmax.f32 %v189_v7, %v231_v15 }
  0x8f   :  { %v229_v45 = vpop.permute.xlu0 %228 }
  0x90   :  { %v268_v47 = vmax.f32 %v188_v11, %v229_v45  ;;  %287 = vst.msk [vmem:[%s679_s1 + $0x48] sm:$0x1] %vm278_vm1, %v269_v29 }
  0x91   :  { %v235_v30 = vpop.permute.xlu1 %234 }
  0x92   :  { %286 = vst.msk [vmem:[%s679_s1 + $0x40] sm:$0xff] %vm276_vm2, %v268_v47  ;;  %v271_v44 = vmax.f32 %v191_v19, %v235_v30 }
  0x93   :  { %v233_v48 = vpop.permute.xlu0 %232 }
  0x94   :  { %v270_v49 = vmax.f32 %v190_v20, %v233_v48  ;;  %289 = vst.msk [vmem:[%s679_s1 + $0x58] sm:$0x1] %vm278_vm1, %v271_v44 }
  0x95   :  { %v239_v50 = vpop.permute.xlu1 %238 }
  0x96   :  { %288 = vst.msk [vmem:[%s679_s1 + $0x50] sm:$0xff] %vm276_vm2, %v270_v49  ;;  %v273_v51 = vmax.f32 %v193_v24, %v239_v50 }
  0x97   :  { %v237_v52 = vpop.permute.xlu0 %236 }
  0x98   :  { %v272_v54 = vmax.f32 %v192_v25, %v237_v52  ;;  %291 = vst.msk [vmem:[%s679_s1 + $0x68] sm:$0x1] %vm278_vm1, %v273_v51 }
  0x99   :  { %v243_v55 = vpop.permute.xlu1 %242 }
  0x9a   :  { %290 = vst.msk [vmem:[%s679_s1 + $0x60] sm:$0xff] %vm276_vm2, %v272_v54  ;;  %v275_v56 = vmax.f32 %v195_v27, %v243_v55 }
  0x9b   :  { %v241_v57 = vpop.permute.xlu0 %240 }
  0x9c   :  { %v274_v58 = vmax.f32 %v194_v28, %v241_v57  ;;  %293 = vst.msk [vmem:[%s679_s1 + $0x78] sm:$0x1] %vm278_vm1, %v275_v56 }
  0x9e   :  { %292 = vst.msk [vmem:[%s679_s1 + $0x70] sm:$0xff] %vm276_vm2, %v274_v58 }

</bundles_post_ra>
